<compile_context>
chip_gen: v7x
topology: tpu7x:2x2x1
jax: 0.10.0
libtpu: 0.0.40
codegen_flags: <defaults>
</compile_context>

<pallas_src>
import math

import jax
import jax.numpy as jnp
from jax.experimental import pallas as pl
from jax.experimental.pallas import tpu as pltpu

_LANE = 128


def _make_conv_tap_kernel(tap_map, n_src):
    """Build a kernel computing a 3x3 conv as 9 tap-GEMMs accumulated in f32.

    tap_map[t] = (source_index, row_offset, col_offset) for tap t = kh*3+kw.
    Kernel refs (in order): (*src_refs, w_ref, b_ref, o_ref)
      src_refs[i]: (1, Hs_i, Ws_i, C_in)   compute dtype (bf16/f32)
      w_ref      : (9, C_in, TN)           compute dtype
      b_ref      : (1, TN)                 float32
      o_ref      : (1, Ho, Wo, TN)         output dtype
    """

    def kernel(*refs):
        src_refs = refs[:n_src]
        w_ref = refs[n_src]
        b_ref = refs[n_src + 1]
        o_ref = refs[n_src + 2]

        _, ho, wo, tn = o_ref.shape
        c_in = src_refs[0].shape[-1]

        acc = jnp.zeros((ho * wo, tn), jnp.float32)
        for t, (si, ro, co) in enumerate(tap_map):
            # Static, unit-stride slice of the tap's source quadrant.
            lhs = src_refs[si][0, ro:ro + ho, co:co + wo, :]       # (ho, wo, C_in)
            lhs = lhs.reshape(ho * wo, c_in)
            acc = acc + jnp.dot(lhs, w_ref[t],
                                preferred_element_type=jnp.float32)
        acc = acc + b_ref[...].astype(jnp.float32)                 # (1, TN) broadcast
        o_ref[0] = acc.reshape(ho, wo, tn).astype(o_ref.dtype)

    return kernel


def downsample_conv(x_nchw, weight, bias, *, stride=2,
                    compute_dtype=jnp.bfloat16):
    """Equivalent of nn.Conv2d(C_in, C_out, 3, stride=stride, padding=1)(x_nchw).

    Accepts/returns PyTorch-style NCHW tensors. The conv hot path (9 tap GEMMs
    + bias) runs in a Pallas kernel; host-side work is pure layout glue of
    roughly one input's worth of bytes.
    """
    if stride not in (1, 2):
        raise ValueError("SimpleUnet only uses stride 1 or 2")

    N, C_in, H, W = x_nchw.shape
    C_out = weight.shape[0]
    H_out = (H + 2 - 3) // stride + 1
    W_out = (W + 2 - 3) // stride + 1

    # ---- layout glue (data movement only) ----
    x = jnp.transpose(x_nchw, (0, 2, 3, 1)).astype(compute_dtype)   # NHWC
    xp = jnp.pad(x, ((0, 0), (1, 1), (1, 1), (0, 0)))               # padding=1

    if stride == 1:
        sources = [xp]
        tap_map = [(0, kh, kw) for kh in range(3) for kw in range(3)]
    else:
        # Parity split: the 9 stride-2 taps become unit-stride slices of the
        # four (even/odd row) x (even/odd col) quadrants of the padded input.
        he, wi = 2 * H_out, 2 * W_out
        xee = xp[:, 0:he + 1:2, 0:wi + 1:2, :]      # (N, H_out+1, W_out+1, C)
        xeo = xp[:, 0:he + 1:2, 1:wi:2, :]          # (N, H_out+1, W_out,   C)
        xoe = xp[:, 1:he:2, 0:wi + 1:2, :]          # (N, H_out,   W_out+1, C)
        xoo = xp[:, 1:he:2, 1:wi:2, :]              # (N, H_out,   W_out,   C)
        sources = [xee, xeo, xoe, xoo]
        tap_map = [
            (0, 0, 0), (1, 0, 0), (0, 0, 1),        # kh = 0, kw = 0,1,2
            (2, 0, 0), (3, 0, 0), (2, 0, 1),        # kh = 1
            (0, 1, 0), (1, 1, 0), (0, 1, 1),        # kh = 2
        ]

    # PyTorch weight [C_out, C_in, 3, 3] -> (tap = kh*3+kw, C_in, C_out).
    w = jnp.transpose(weight, (2, 3, 1, 0)).reshape(9, C_in, C_out)
    # Lane-dense output: pad C_out up to a multiple of 128.
    C_pad = ((C_out + _LANE - 1) // _LANE) * _LANE
    w = jnp.pad(w, ((0, 0), (0, 0), (0, C_pad - C_out))).astype(compute_dtype)
    b = jnp.pad(bias.astype(jnp.float32), (0, C_pad - C_out)).reshape(1, C_pad)

    TN = 256 if C_pad % 256 == 0 else 128
    grid = (N, C_pad // TN)

    src_specs = [
        pl.BlockSpec((1,) + s.shape[1:], lambda n, co: (n, 0, 0, 0))
        for s in sources
    ]
    in_specs = src_specs + [
        pl.BlockSpec((9, C_in, TN), lambda n, co: (0, 0, co)),
        pl.BlockSpec((1, TN), lambda n, co: (0, co)),
    ]
    out_spec = pl.BlockSpec((1, H_out, W_out, TN), lambda n, co: (n, 0, 0, co))

    # VMEM budget per grid step (double-buffered), bounded for v7x's 64 MiB.
    isz = jnp.dtype(compute_dtype).itemsize
    step_bytes = (
        sum(math.prod(s.shape[1:]) for s in sources) * isz
        + 9 * C_in * TN * isz + TN * 4 + H_out * W_out * TN * 4)
    vmem_limit = int(min(max(4 * step_bytes, 32 * 2 ** 20), 48 * 2 ** 20))

    flops = 2 * N * H_out * W_out * 9 * C_in * C_pad
    bytes_accessed = (sum(int(s.size) for s in sources) * isz
                      + int(w.size) * isz + int(b.size) * 4
                      + N * H_out * W_out * C_pad * 4)

    out = pl.pallas_call(
        _make_conv_tap_kernel(tuple(tap_map), len(sources)),
        out_shape=jax.ShapeDtypeStruct((N, H_out, W_out, C_pad), x_nchw.dtype),
        grid=grid,
        in_specs=in_specs,
        out_specs=out_spec,
        compiler_params=pltpu.CompilerParams(
            dimension_semantics=("parallel", "parallel"),
            vmem_limit_bytes=vmem_limit),
        cost_estimate=pl.CostEstimate(
            flops=flops, transcendentals=0, bytes_accessed=bytes_accessed),
    )(*sources, w, b)

    out = out[..., :C_out]                       # drop lane padding
    # TODO(synk): downstream UNet layers could consume NHWC directly and skip
    # this transpose; it is kept to preserve the PyTorch NCHW interface.
    return jnp.transpose(out, (0, 3, 1, 2))


def init_downsample_params(key, channels, out_channels=None):
    """Deterministic init matching nn.Conv2d default (kaiming-uniform bounds)."""
    out_channels = out_channels or channels
    k_w, k_b = jax.random.split(key)
    fan_in = channels * 3 * 3
    bound = 1.0 / math.sqrt(fan_in)
    weight = jax.random.uniform(
        k_w, (out_channels, channels, 3, 3), jnp.float32, -bound, bound)
    bias = jax.random.uniform(k_b, (out_channels,), jnp.float32, -bound, bound)
    return weight, bias


if __name__ == "__main__":
    key = jax.random.PRNGKey(0)
    k_x, k_p, k_x1, k_p1 = jax.random.split(key, 4)

    # --- stride=2 Downsample(channels) : the main "halve the size" layer ---
    N, C, H, W = 2, 4, 16, 16
    x = jax.random.normal(k_x, (N, C, H, W), jnp.float32)
    weight, bias = init_downsample_params(k_p, C)

    ref = jax.lax.conv_general_dilated(
        x, weight, window_strides=(2, 2), padding=((1, 1), (1, 1)),
        dimension_numbers=("NCHW", "OIHW", "NCHW")) + bias[None, :, None, None]

    # strict f32 check
    y32 = jax.block_until_ready(
        downsample_conv(x, weight, bias, stride=2, compute_dtype=jnp.float32))
    assert y32.shape == (N, C, H // 2, W // 2), y32.shape
    assert float(jnp.max(jnp.abs(y32 - ref))) < 1e-4

    # default bf16 fast path (f32 accumulation) — loose tolerance vs f32 ref
    ybf = jax.block_until_ready(downsample_conv(x, weight, bias, stride=2))
    assert ybf.shape == (N, C, H // 2, W // 2), ybf.shape
    assert float(jnp.max(jnp.abs(ybf - ref))) < 5e-2

    # --- stride=1 Downsample(1, channels, 1): first layer of Down ---
    x1 = jax.random.normal(k_x1, (N, 1, H, W), jnp.float32)
    w1, b1 = init_downsample_params(k_p1, 1, out_channels=C)
    y1 = jax.block_until_ready(
        downsample_conv(x1, w1, b1, stride=1, compute_dtype=jnp.float32))
    ref1 = jax.lax.conv_general_dilated(
        x1, w1, window_strides=(1, 1), padding=((1, 1), (1, 1)),
        dimension_numbers=("NCHW", "OIHW", "NCHW")) + b1[None, :, None, None]
    assert y1.shape == (N, C, H, W), y1.shape
    assert float(jnp.max(jnp.abs(y1 - ref1))) < 1e-4

    print("KERNEL_OK")
</pallas_src>

<mosaic_0001>
module attributes {stable_mosaic.version = 11 : i64} {
  func.func @kernel(%arg0: i32, %arg1: i32, %arg2: memref<1x9x9x4xf32, #tpu.memory_space<vmem>>, %arg3: memref<1x9x8x4xf32, #tpu.memory_space<vmem>>, %arg4: memref<1x8x9x4xf32, #tpu.memory_space<vmem>>, %arg5: memref<1x8x8x4xf32, #tpu.memory_space<vmem>>, %arg6: memref<9x4x128xf32, #tpu.memory_space<vmem>>, %arg7: memref<1x128xf32, #tpu.memory_space<vmem>>, %arg8: memref<1x8x8x128xf32, #tpu.memory_space<vmem>>) attributes {dimension_semantics = [#tpu.dimension_semantics<parallel>, #tpu.dimension_semantics<parallel>], iteration_bounds = array<i64: 2, 1>, scalar_prefetch = 0 : i64, scratch_operands = 0 : i64, tpu.core_type = #tpu.core_type<tc>, window_params = [{transform_indices = @transform_0, window_bounds = array<i64: 1, 9, 9, 4>}, {transform_indices = @transform_1, window_bounds = array<i64: 1, 9, 8, 4>}, {transform_indices = @transform_2, window_bounds = array<i64: 1, 8, 9, 4>}, {transform_indices = @transform_3, window_bounds = array<i64: 1, 8, 8, 4>}, {transform_indices = @transform_4, window_bounds = array<i64: 9, 4, 128>}, {transform_indices = @transform_5, window_bounds = array<i64: 1, 128>}, {transform_indices = @transform_6, window_bounds = array<i64: 1, 8, 8, 128>}]} {
    %cst = arith.constant 0.000000e+00 : f32
    %0 = vector.broadcast %cst : f32 to vector<64x128xf32>
    %c0 = arith.constant 0 : index
    %c0_0 = arith.constant 0 : index
    %c0_1 = arith.constant 0 : index
    %c0_2 = arith.constant 0 : index
    %1 = vector.load %arg2[%c0, %c0_0, %c0_1, %c0_2] : memref<1x9x9x4xf32, #tpu.memory_space<vmem>>, vector<1x8x8x4xf32>
    %2 = vector.shape_cast %1 : vector<1x8x8x4xf32> to vector<8x8x4xf32>
    %3 = vector.shape_cast %2 : vector<8x8x4xf32> to vector<64x4xf32>
    %c0_3 = arith.constant 0 : index
    %c0_4 = arith.constant 0 : index
    %c0_5 = arith.constant 0 : index
    %4 = vector.load %arg6[%c0_3, %c0_4, %c0_5] : memref<9x4x128xf32, #tpu.memory_space<vmem>>, vector<1x4x128xf32>
    %5 = vector.shape_cast %4 : vector<1x4x128xf32> to vector<4x128xf32>
    %cst_6 = arith.constant dense<0.000000e+00> : vector<64x128xf32>
    %6 = tpu.matmul %3, %5, %cst_6 {dimension_numbers = #tpu.dot_dimension_numbers<[1], [0], [0], [1], [0, 0, 1, 1], [], []>} : vector<64x4xf32>, vector<4x128xf32>, vector<64x128xf32> -> vector<64x128xf32>
    %7 = arith.addf %0, %6 : vector<64x128xf32>
    %c0_7 = arith.constant 0 : index
    %c0_8 = arith.constant 0 : index
    %c0_9 = arith.constant 0 : index
    %c0_10 = arith.constant 0 : index
    %8 = vector.load %arg3[%c0_7, %c0_8, %c0_9, %c0_10] : memref<1x9x8x4xf32, #tpu.memory_space<vmem>>, vector<1x8x8x4xf32>
    %9 = vector.shape_cast %8 : vector<1x8x8x4xf32> to vector<8x8x4xf32>
    %10 = vector.shape_cast %9 : vector<8x8x4xf32> to vector<64x4xf32>
    %c1 = arith.constant 1 : index
    %c0_11 = arith.constant 0 : index
    %c0_12 = arith.constant 0 : index
    %11 = vector.load %arg6[%c1, %c0_11, %c0_12] : memref<9x4x128xf32, #tpu.memory_space<vmem>>, vector<1x4x128xf32>
    %12 = vector.shape_cast %11 : vector<1x4x128xf32> to vector<4x128xf32>
    %cst_13 = arith.constant dense<0.000000e+00> : vector<64x128xf32>
    %13 = tpu.matmul %10, %12, %cst_13 {dimension_numbers = #tpu.dot_dimension_numbers<[1], [0], [0], [1], [0, 0, 1, 1], [], []>} : vector<64x4xf32>, vector<4x128xf32>, vector<64x128xf32> -> vector<64x128xf32>
    %14 = arith.addf %7, %13 : vector<64x128xf32>
    %c0_14 = arith.constant 0 : index
    %c0_15 = arith.constant 0 : index
    %c1_16 = arith.constant 1 : index
    %c0_17 = arith.constant 0 : index
    %15 = vector.load %arg2[%c0_14, %c0_15, %c1_16, %c0_17] : memref<1x9x9x4xf32, #tpu.memory_space<vmem>>, vector<1x8x8x4xf32>
    %16 = vector.shape_cast %15 : vector<1x8x8x4xf32> to vector<8x8x4xf32>
    %17 = vector.shape_cast %16 : vector<8x8x4xf32> to vector<64x4xf32>
    %c2 = arith.constant 2 : index
    %c0_18 = arith.constant 0 : index
    %c0_19 = arith.constant 0 : index
    %18 = vector.load %arg6[%c2, %c0_18, %c0_19] : memref<9x4x128xf32, #tpu.memory_space<vmem>>, vector<1x4x128xf32>
    %19 = vector.shape_cast %18 : vector<1x4x128xf32> to vector<4x128xf32>
    %cst_20 = arith.constant dense<0.000000e+00> : vector<64x128xf32>
    %20 = tpu.matmul %17, %19, %cst_20 {dimension_numbers = #tpu.dot_dimension_numbers<[1], [0], [0], [1], [0, 0, 1, 1], [], []>} : vector<64x4xf32>, vector<4x128xf32>, vector<64x128xf32> -> vector<64x128xf32>
    %21 = arith.addf %14, %20 : vector<64x128xf32>
    %c0_21 = arith.constant 0 : index
    %c0_22 = arith.constant 0 : index
    %c0_23 = arith.constant 0 : index
    %c0_24 = arith.constant 0 : index
    %22 = vector.load %arg4[%c0_21, %c0_22, %c0_23, %c0_24] : memref<1x8x9x4xf32, #tpu.memory_space<vmem>>, vector<1x8x8x4xf32>
    %23 = vector.shape_cast %22 : vector<1x8x8x4xf32> to vector<8x8x4xf32>
    %24 = vector.shape_cast %23 : vector<8x8x4xf32> to vector<64x4xf32>
    %c3 = arith.constant 3 : index
    %c0_25 = arith.constant 0 : index
    %c0_26 = arith.constant 0 : index
    %25 = vector.load %arg6[%c3, %c0_25, %c0_26] : memref<9x4x128xf32, #tpu.memory_space<vmem>>, vector<1x4x128xf32>
    %26 = vector.shape_cast %25 : vector<1x4x128xf32> to vector<4x128xf32>
    %cst_27 = arith.constant dense<0.000000e+00> : vector<64x128xf32>
    %27 = tpu.matmul %24, %26, %cst_27 {dimension_numbers = #tpu.dot_dimension_numbers<[1], [0], [0], [1], [0, 0, 1, 1], [], []>} : vector<64x4xf32>, vector<4x128xf32>, vector<64x128xf32> -> vector<64x128xf32>
    %28 = arith.addf %21, %27 : vector<64x128xf32>
    %c0_28 = arith.constant 0 : index
    %c0_29 = arith.constant 0 : index
    %c0_30 = arith.constant 0 : index
    %c0_31 = arith.constant 0 : index
    %29 = vector.load %arg5[%c0_28, %c0_29, %c0_30, %c0_31] : memref<1x8x8x4xf32, #tpu.memory_space<vmem>>, vector<1x8x8x4xf32>
    %30 = vector.shape_cast %29 : vector<1x8x8x4xf32> to vector<8x8x4xf32>
    %31 = vector.shape_cast %30 : vector<8x8x4xf32> to vector<64x4xf32>
    %c4 = arith.constant 4 : index
    %c0_32 = arith.constant 0 : index
    %c0_33 = arith.constant 0 : index
    %32 = vector.load %arg6[%c4, %c0_32, %c0_33] : memref<9x4x128xf32, #tpu.memory_space<vmem>>, vector<1x4x128xf32>
    %33 = vector.shape_cast %32 : vector<1x4x128xf32> to vector<4x128xf32>
    %cst_34 = arith.constant dense<0.000000e+00> : vector<64x128xf32>
    %34 = tpu.matmul %31, %33, %cst_34 {dimension_numbers = #tpu.dot_dimension_numbers<[1], [0], [0], [1], [0, 0, 1, 1], [], []>} : vector<64x4xf32>, vector<4x128xf32>, vector<64x128xf32> -> vector<64x128xf32>
    %35 = arith.addf %28, %34 : vector<64x128xf32>
    %c0_35 = arith.constant 0 : index
    %c0_36 = arith.constant 0 : index
    %c1_37 = arith.constant 1 : index
    %c0_38 = arith.constant 0 : index
    %36 = vector.load %arg4[%c0_35, %c0_36, %c1_37, %c0_38] : memref<1x8x9x4xf32, #tpu.memory_space<vmem>>, vector<1x8x8x4xf32>
    %37 = vector.shape_cast %36 : vector<1x8x8x4xf32> to vector<8x8x4xf32>
    %38 = vector.shape_cast %37 : vector<8x8x4xf32> to vector<64x4xf32>
    %c5 = arith.constant 5 : index
    %c0_39 = arith.constant 0 : index
    %c0_40 = arith.constant 0 : index
    %39 = vector.load %arg6[%c5, %c0_39, %c0_40] : memref<9x4x128xf32, #tpu.memory_space<vmem>>, vector<1x4x128xf32>
    %40 = vector.shape_cast %39 : vector<1x4x128xf32> to vector<4x128xf32>
    %cst_41 = arith.constant dense<0.000000e+00> : vector<64x128xf32>
    %41 = tpu.matmul %38, %40, %cst_41 {dimension_numbers = #tpu.dot_dimension_numbers<[1], [0], [0], [1], [0, 0, 1, 1], [], []>} : vector<64x4xf32>, vector<4x128xf32>, vector<64x128xf32> -> vector<64x128xf32>
    %42 = arith.addf %35, %41 : vector<64x128xf32>
    %c0_42 = arith.constant 0 : index
    %c1_43 = arith.constant 1 : index
    %c0_44 = arith.constant 0 : index
    %c0_45 = arith.constant 0 : index
    %43 = vector.load %arg2[%c0_42, %c1_43, %c0_44, %c0_45] : memref<1x9x9x4xf32, #tpu.memory_space<vmem>>, vector<1x8x8x4xf32>
    %44 = vector.shape_cast %43 : vector<1x8x8x4xf32> to vector<8x8x4xf32>
    %45 = vector.shape_cast %44 : vector<8x8x4xf32> to vector<64x4xf32>
    %c6 = arith.constant 6 : index
    %c0_46 = arith.constant 0 : index
    %c0_47 = arith.constant 0 : index
    %46 = vector.load %arg6[%c6, %c0_46, %c0_47] : memref<9x4x128xf32, #tpu.memory_space<vmem>>, vector<1x4x128xf32>
    %47 = vector.shape_cast %46 : vector<1x4x128xf32> to vector<4x128xf32>
    %cst_48 = arith.constant dense<0.000000e+00> : vector<64x128xf32>
    %48 = tpu.matmul %45, %47, %cst_48 {dimension_numbers = #tpu.dot_dimension_numbers<[1], [0], [0], [1], [0, 0, 1, 1], [], []>} : vector<64x4xf32>, vector<4x128xf32>, vector<64x128xf32> -> vector<64x128xf32>
    %49 = arith.addf %42, %48 : vector<64x128xf32>
    %c0_49 = arith.constant 0 : index
    %c1_50 = arith.constant 1 : index
    %c0_51 = arith.constant 0 : index
    %c0_52 = arith.constant 0 : index
    %50 = vector.load %arg3[%c0_49, %c1_50, %c0_51, %c0_52] : memref<1x9x8x4xf32, #tpu.memory_space<vmem>>, vector<1x8x8x4xf32>
    %51 = vector.shape_cast %50 : vector<1x8x8x4xf32> to vector<8x8x4xf32>
    %52 = vector.shape_cast %51 : vector<8x8x4xf32> to vector<64x4xf32>
    %c7 = arith.constant 7 : index
    %c0_53 = arith.constant 0 : index
    %c0_54 = arith.constant 0 : index
    %53 = vector.load %arg6[%c7, %c0_53, %c0_54] : memref<9x4x128xf32, #tpu.memory_space<vmem>>, vector<1x4x128xf32>
    %54 = vector.shape_cast %53 : vector<1x4x128xf32> to vector<4x128xf32>
    %cst_55 = arith.constant dense<0.000000e+00> : vector<64x128xf32>
    %55 = tpu.matmul %52, %54, %cst_55 {dimension_numbers = #tpu.dot_dimension_numbers<[1], [0], [0], [1], [0, 0, 1, 1], [], []>} : vector<64x4xf32>, vector<4x128xf32>, vector<64x128xf32> -> vector<64x128xf32>
    %56 = arith.addf %49, %55 : vector<64x128xf32>
    %c0_56 = arith.constant 0 : index
    %c1_57 = arith.constant 1 : index
    %c1_58 = arith.constant 1 : index
    %c0_59 = arith.constant 0 : index
    %57 = vector.load %arg2[%c0_56, %c1_57, %c1_58, %c0_59] : memref<1x9x9x4xf32, #tpu.memory_space<vmem>>, vector<1x8x8x4xf32>
    %58 = vector.shape_cast %57 : vector<1x8x8x4xf32> to vector<8x8x4xf32>
    %59 = vector.shape_cast %58 : vector<8x8x4xf32> to vector<64x4xf32>
    %c8 = arith.constant 8 : index
    %c0_60 = arith.constant 0 : index
    %c0_61 = arith.constant 0 : index
    %60 = vector.load %arg6[%c8, %c0_60, %c0_61] : memref<9x4x128xf32, #tpu.memory_space<vmem>>, vector<1x4x128xf32>
    %61 = vector.shape_cast %60 : vector<1x4x128xf32> to vector<4x128xf32>
    %cst_62 = arith.constant dense<0.000000e+00> : vector<64x128xf32>
    %62 = tpu.matmul %59, %61, %cst_62 {dimension_numbers = #tpu.dot_dimension_numbers<[1], [0], [0], [1], [0, 0, 1, 1], [], []>} : vector<64x4xf32>, vector<4x128xf32>, vector<64x128xf32> -> vector<64x128xf32>
    %63 = arith.addf %56, %62 : vector<64x128xf32>
    %c0_63 = arith.constant 0 : index
    %c0_64 = arith.constant 0 : index
    %64 = vector.load %arg7[%c0_63, %c0_64] : memref<1x128xf32, #tpu.memory_space<vmem>>, vector<1x128xf32>
    %65 = vector.broadcast %64 : vector<1x128xf32> to vector<64x128xf32>
    %66 = arith.addf %63, %65 : vector<64x128xf32>
    %67 = vector.shape_cast %66 : vector<64x128xf32> to vector<8x8x128xf32>
    %c0_65 = arith.constant 0 : index
    %c0_66 = arith.constant 0 : index
    %c0_67 = arith.constant 0 : index
    %c0_68 = arith.constant 0 : index
    %68 = vector.load %arg8[%c0_65, %c0_66, %c0_67, %c0_68] : memref<1x8x8x128xf32, #tpu.memory_space<vmem>>, vector<1x8x8x128xf32>
    %69 = vector.shape_cast %68 : vector<1x8x8x128xf32> to vector<8x8x128xf32>
    %70 = vector.shape_cast %67 : vector<8x8x128xf32> to vector<1x8x8x128xf32>
    tpu.vector_store %arg8[%c0_65, %c0_66, %c0_67, %c0_68], %70 {strides = array<i32>} : memref<1x8x8x128xf32, #tpu.memory_space<vmem>>, vector<1x8x8x128xf32>,
    return
  }
  func.func @transform_0(%arg0: i32, %arg1: i32) -> (i32, i32, i32, i32) {
    %c0_i32 = arith.constant 0 : i32
    %c0_i32_0 = arith.constant 0 : i32
    %c0_i32_1 = arith.constant 0 : i32
    %c0_i32_2 = arith.constant 0 : i32
    return %arg0, %c0_i32, %c0_i32_0, %c0_i32_1 : i32, i32, i32, i32
  }
  func.func @transform_1(%arg0: i32, %arg1: i32) -> (i32, i32, i32, i32) {
    %c0_i32 = arith.constant 0 : i32
    %c0_i32_0 = arith.constant 0 : i32
    %c0_i32_1 = arith.constant 0 : i32
    %c0_i32_2 = arith.constant 0 : i32
    return %arg0, %c0_i32, %c0_i32_0, %c0_i32_1 : i32, i32, i32, i32
  }
  func.func @transform_2(%arg0: i32, %arg1: i32) -> (i32, i32, i32, i32) {
    %c0_i32 = arith.constant 0 : i32
    %c0_i32_0 = arith.constant 0 : i32
    %c0_i32_1 = arith.constant 0 : i32
    %c0_i32_2 = arith.constant 0 : i32
    return %arg0, %c0_i32, %c0_i32_0, %c0_i32_1 : i32, i32, i32, i32
  }
  func.func @transform_3(%arg0: i32, %arg1: i32) -> (i32, i32, i32, i32) {
    %c0_i32 = arith.constant 0 : i32
    %c0_i32_0 = arith.constant 0 : i32
    %c0_i32_1 = arith.constant 0 : i32
    %c0_i32_2 = arith.constant 0 : i32
    return %arg0, %c0_i32, %c0_i32_0, %c0_i32_1 : i32, i32, i32, i32
  }
  func.func @transform_4(%arg0: i32, %arg1: i32) -> (i32, i32, i32) {
    %c0_i32 = arith.constant 0 : i32
    %c0_i32_0 = arith.constant 0 : i32
    %c0_i32_1 = arith.constant 0 : i32
    return %c0_i32, %c0_i32_0, %arg1 : i32, i32, i32
  }
  func.func @transform_5(%arg0: i32, %arg1: i32) -> (i32, i32) {
    %c0_i32 = arith.constant 0 : i32
    %c0_i32_0 = arith.constant 0 : i32
    return %c0_i32, %arg1 : i32, i32
  }
  func.func @transform_6(%arg0: i32, %arg1: i32) -> (i32, i32, i32, i32) {
    %c0_i32 = arith.constant 0 : i32
    %c0_i32_0 = arith.constant 0 : i32
    %c0_i32_1 = arith.constant 0 : i32
    return %arg0, %c0_i32, %c0_i32_0, %arg1 : i32, i32, i32, i32
  }
}

</mosaic_0001>

<bundles_post_ra>
// kernel: tpu_custom_call.1
= control target key start
LH: loop header
LB: loop body
LE: loop exit
PB: predicated region body
PF: predicated region fallthrough
CT: control target
= control target key end

     0   :  { %11 = vsyncpa [#allocation3], 0  ;;  %s2811_s0 = inlined_call_operand.vmem [shape: f32[2,9,9,4], index: 0, kind: input, shape index: {}]   ;;  %s2812_s1 = inlined_call_operand.vmem [shape: f32[2,9,8,4], index: 1, kind: input, shape index: {}]   ;;  %s2813_s2 = inlined_call_operand.vmem [shape: f32[2,8,9,4], index: 2, kind: input, shape index: {}]   ;;  %s2814_s3 = inlined_call_operand.vmem [shape: f32[2,8,8,4], index: 3, kind: input, shape index: {}]   ;;  %s2815_s4 = inlined_call_operand.vmem [shape: f32[9,4,128], index: 4, kind: input, shape index: {}]   ;;  %s2816_s5 = inlined_call_operand.vmem [shape: f32[1,128], index: 5, kind: input, shape index: {}]   ;;  %s2817_s6 = inlined_call_operand.hbm [shape: f32[2,8,8,128], index: 6, kind: output, shape index: {}]  }
   0x1   :  { %13 = vsyncpa [#allocation3 + $0x1], 0  ;;  %s2451_s21 = smov 0   ;;  %s2453_s22 = smov 0  }
   0x2   :  { %s2455_s23 = smov 0   ;;  %s2457_s24 = smov 0  }
   0x3   :  { %s2459_s25 = smov 0   ;;  %s2461_s26 = smov 0  }
   0x4 LB: > { %s1865_s27 = sadd.s32 4294967295, %s2411_s26   ;;  %s1866_s28 = sadd.s32 4294967294, %s2411_s26   ;;  %s2411_s26 = sphi %s2461_s26, %s19_s26   ;;  %s2407_s25 = sphi %s2459_s25, %s2824_s25   ;;  %s2403_s24 = sphi %s2457_s24, %s2823_s24   ;;  %s2399_s23 = sphi %s2455_s23, %s2822_s23   ;;  %s2395_s22 = sphi %s2453_s22, %s2821_s22   ;;  %s2391_s21 = sphi %s2451_s21, %s2820_s21  }
   0x5   : > { %s31_s29 = sadd.s32 1, %s2407_s25  ;;  %s196_s30 = sadd.s32 1, %s2399_s23 }
   0x6   : > { %p33_p0 = scmp.ge.s32.totalorder %s31_s29, 2  ;;  %p206_p1 = scmp.ne.s32.totalorder %s2399_s23, %s2395_s22 }
   0x7   : > { %p207_p2 = scmp.eq.s32.totalorder %s1865_s27, 1  ;;  %p212_p3 = scmp.ne.s32.totalorder %s2395_s22, %s2391_s21 }
   0x8   : > { %s2826_s29 = smov (%p33_p0, %s31_s29), 0  ;;  %p213_p5 = scmp.eq.s32.totalorder %s1866_s28, 1 }
   0x9   : > { %p2491_p4 = por %p207_p2, %p206_p1  ;;  %s191_s8 = ssub.s32 %s2407_s25, %s2826_s29 }
   0xa   : > { %p1871_p6 = scmp.ge.s32.totalorder %s2411_s26, 1  ;;  %p194_p7 = scmp.eq.s32.totalorder %s191_s8, 0 }
   0xb   : > { %p2498_p8 = por %p213_p5, %p212_p3  ;;  %p276_p9 = scmp.lt.s32.totalorder %s2411_s26, 3 }
   0xc   : > { %s2504_s10 = scalar_select %p194_p7, %s2399_s23, %s196_s30  }
   0xd   : > { %p277_p10 = pnand %p1871_p6, %p276_p9 }
   0xe   : > { %v1879_v0 = vld [vmem:[%s2815_s4 + $0x4] sm:$0xf] (!%p277_p10)  ;;  %vm399_vm0 = vcmask (!%p277_p10), 1043456   ;;  %v2512_v1 = vld [vmem:[%s2815_s4 + $0x10] sm:$0xf] (!%p277_p10)  ;;  %p328_p11 = scmp.lt.s32.totalorder (!%p277_p10), %s2403_s24, 1 }
   0xf   : > { %280 = sbr.rel (%p277_p10) target bundleno = 330 (0x14a), region = 44  ;;  %2082 = vmatprep.subr.msk.mxu1 (!%p277_p10), %vm399_vm0, %v1879_v0  ;;  %2138 = vmatprep.subr.msk.mxu0 (!%p277_p10), %vm399_vm0, %v2512_v1  ;;  %v363_v2 = vld [vmem:[%s2815_s4] sm:$0xf] (!%p277_p10)  ;;  %v1928_v3 = vld [vmem:[%s2815_s4 + $0x14] sm:$0xf] (!%p277_p10)  ;;  %vm374_vm1 = vcmask (!%p277_p10), 31744  }
  0x10   : > { %2083 = vmatpush3.msk.msra.mxu1 (!%p277_p10), %vm399_vm0, %v1879_v0  ;;  %2139 = vmatpush3.msk.msra.mxu0 (!%p277_p10), %vm399_vm0, %v2512_v1  ;;  %v1946_v10 = vld [vmem:[%s2815_s4 + $0x18] sm:$0xf] (!%p277_p10)  ;;  %v1898_v11 = vld [vmem:[%s2815_s4 + $0x8] sm:$0xf] (!%p277_p10)  ;;  %v1964_v20 = vld [vmem:[%s2815_s4 + $0x1c] sm:$0xf] (!%p277_p10) }
  0x11   : > { %2096 = vmatprep.subr.msk.mxu1 (!%p277_p10), %vm399_vm0, %v363_v2  ;;  %2152 = vmatprep.subr.msk.mxu0 (!%p277_p10), %vm399_vm0, %v1928_v3  ;;  %v1908_v29 = vld [vmem:[%s2815_s4 + $0xc] sm:$0xf] (!%p277_p10)  ;;  %v1982_v35 = vld [vmem:[%s2815_s4 + $0x20] sm:$0xf] (!%p277_p10)  ;;  %s2413_s18 = smov (!%p277_p10), [#allocation2]  }
  0x16   : > { %s2528_s19 = scalar_select %p328_p11, %s2403_s24, 1 }
  0x18   : > { %s2275_s20 = smul.u32 72, %s2528_s19  ;;  %s1998_s27 = sshll.u32 %s2528_s19, 7 }
  0x19   : > { %s1999_s28 = sshll.u32 %s2528_s19, 6  ;;  %s2551_s17 = scalar_lea.vmem %s2813_s2, %s1998_s27 }
  0x1a   : > { %s2538_s11 = scalar_lea.vmem %s2812_s1, %s2275_s20  ;;  %s2543_s14 = scalar_lea.vmem %s2814_s3, %s1999_s28  ;;  %v1090_v14 = vld [vmem:[%s2551_s17 + $0x1] sm:$0xff]  ;;  %v1091_v16 = vld [vmem:[%s2551_s17 + $0x11] sm:$0xff] }
  0x1b   : > { %v940_v4 = vld [vmem:[%s2543_s14] sm:$0xff]  ;;  %v941_v6 = vld [vmem:[%s2543_s14 + $0x8] sm:$0xff]  ;;  %v942_v8 = vld [vmem:[%s2543_s14 + $0x10] sm:$0xff]  ;;  %s2274_s30 = smul.u32 144, %s2528_s19  ;;  %s2000_s19 = sshll.u32 %s2403_s24, 10 }
  0x1c   : > { %v364_v5 = vld [vmem:[%s2538_s11] sm:$0xff]  ;;  %2140 = vmatprep.mubr.msk.f32.mxu0 %vm374_vm1, %v940_v4  ;;  %v2556_v7 = vld [vmem:[%s2538_s11 + $0x8] sm:$0xff]  ;;  %v2560_v9 = vld [vmem:[%s2538_s11 + $0x10] sm:$0xff]  ;;  %s2757_s15 = scalar_lea.hbm %s2817_s6, %s2000_s19  ;;  %s2337_s20 = sshll.u32 %s2413_s18, 4  ;;  %s2338_s20 = int_to_ptr.vmem [resolvable:$false] %s2337_s20 }
  0x1d   : > { %2084 = vmatprep.mubr.msk.f32.mxu1 %vm374_vm1, %v364_v5  ;;  %2141 = vmatmul.mubr.msk.f32.vlgmr.msra.gmra.mrb[0].mxu0 %vm374_vm1, %v941_v6  ;;  %v943_v12 = vld [vmem:[%s2543_s14 + $0x18] sm:$0xff]  ;;  %v2582_v15 = vld [vmem:[%s2538_s11 + $0x20] sm:$0xff]  ;;  %v2595_v17 = vld [vmem:[%s2538_s11 + $0x28] sm:$0xff]  ;;  %s2601_s12 = scalar_lea.vmem %s2811_s0, %s2274_s30  ;;  %s2339_s27 = scalar_lea.vmem %s2338_s20, 2048 }
  0x1e   : > { %2085 = vmatmul.mubr.msk.f32.vlgmr.msra.gmra.mrb[0].mxu1 %vm374_vm1, %v2556_v7  ;;  %2153 = vmatpush3.msk.msra.mxu0 %vm399_vm0, %v1928_v3  ;;  %v2575_v13 = vld [vmem:[%s2538_s11 + $0x18] sm:$0xff]  ;;  %v1092_v18 = vld [vmem:[%s2551_s17 + $0x21] sm:$0xff]  ;;  %v2604_v19 = vld [vmem:[%s2538_s11 + $0x30] sm:$0xff] }
  0x1f   : > { %2097 = vmatpush3.msk.msra.mxu1 %vm399_vm0, %v363_v2  ;;  %2143 = vmatprep.mubr.msk.f32.mxu0 %vm374_vm1, %v942_v8  ;;  %v1093_v21 = vld [vmem:[%s2551_s17 + $0x31] sm:$0xff]  ;;  %v1094_v23 = vld [vmem:[%s2551_s17 + $0x41] sm:$0xff] }
  0x20   : > { %2087 = vmatprep.mubr.msk.f32.mxu1 %vm374_vm1, %v2560_v9  ;;  %2166 = vmatprep.subr.msk.mxu0 %vm399_vm0, %v1946_v10  ;;  %v2616_v22 = vld [vmem:[%s2538_s11 + $0x38] sm:$0xff]  ;;  %v355_v24 = vld [vmem:[%s2601_s12] sm:$0xff]  ;;  %v356_v26 = vld [vmem:[%s2601_s12 + $0x10] sm:$0xff] }
  0x21   : > { %2110 = vmatprep.subr.msk.mxu1 %vm399_vm0, %v1898_v11  ;;  %2144 = vmatmul.mubr.msk.f32.gmra.mrb[2].mxu0 %vm374_vm1, %v943_v12  ;;  %v1095_v25 = vld [vmem:[%s2551_s17 + $0x51] sm:$0xff]  ;;  %v1096_v27 = vld [vmem:[%s2551_s17 + $0x61] sm:$0xff] }
  0x22   : > { %2088 = vmatmul.mubr.msk.f32.gmra.mrb[2].mxu1 %vm374_vm1, %v2575_v13  ;;  %2154 = vmatprep.mubr.msk.f32.mxu0 %vm374_vm1, %v1090_v14  ;;  %v357_v28 = vld [vmem:[%s2601_s12 + $0x20] sm:$0xff]  ;;  %v1097_v30 = vld [vmem:[%s2551_s17 + $0x71] sm:$0xff]  ;;  %v945_v56 = vld [vmem:[%s2543_s14 + $0x28] sm:$0xff] }
  0x23   : > { %2090 = vmatprep.mubr.msk.f32.mxu1 %vm374_vm1, %v2582_v15  ;;  %v358_v31 = vld [vmem:[%s2601_s12 + $0x30] sm:$0xff]  ;;  %v359_v32 = vld [vmem:[%s2601_s12 + $0x40] sm:$0xff]  ;;  %v947_v59 = vld [vmem:[%s2543_s14 + $0x38] sm:$0xff] }
  0x24   : > { %v360_v33 = vld [vmem:[%s2601_s12 + $0x50] sm:$0xff]  ;;  %v361_v34 = vld [vmem:[%s2601_s12 + $0x60] sm:$0xff] }
  0x25   : > { %2155 = vmatmul.mubr.msk.f32.vlgmr.msra.gmra.mrb[0].mxu0 %vm374_vm1, %v1091_v16  ;;  %v362_v36 = vld [vmem:[%s2601_s12 + $0x70] sm:$0xff]  ;;  %v640_v37 = vld [vmem:[%s2601_s12 + $0x1] sm:$0xff] }
  0x26   : > { %2091 = vmatmul.mubr.msk.f32.gmra.mrb[4].mxu1 %vm374_vm1, %v2595_v17  ;;  %2167 = vmatpush3.msk.msra.mxu0 %vm399_vm0, %v1946_v10  ;;  %v641_v38 = vld [vmem:[%s2601_s12 + $0x11] sm:$0xff]  ;;  %v642_v39 = vld [vmem:[%s2601_s12 + $0x21] sm:$0xff] }
  0x27   : > { %2157 = vmatprep.mubr.msk.f32.mxu0 %vm374_vm1, %v1092_v18  ;;  %2093 = vmatprep.mubr.msk.f32.mxu1 %vm374_vm1, %v2604_v19  ;;  %v1945_v40 = vld [vmem:[%s2601_s12 + $0x80] sm:$0xff]  ;;  %v643_v41 = vld [vmem:[%s2601_s12 + $0x31] sm:$0xff] }
  0x28   : > { %2180 = vmatprep.subr.msk.mxu0 %vm399_vm0, %v1964_v20  ;;  %v644_v42 = vld [vmem:[%s2601_s12 + $0x41] sm:$0xff]  ;;  %v645_v43 = vld [vmem:[%s2601_s12 + $0x51] sm:$0xff] }
  0x29   : > { %2158 = vmatmul.mubr.msk.f32.gmra.mrb[2].mxu0 %vm374_vm1, %v1093_v21  ;;  %v646_v44 = vld [vmem:[%s2601_s12 + $0x61] sm:$0xff]  ;;  %v647_v45 = vld [vmem:[%s2601_s12 + $0x71] sm:$0xff] }
  0x2a   : > { %2094 = vmatmul.mubr.msk.f32.gmra.mrb[6].mxu1 %vm374_vm1, %v2616_v22  ;;  %2160 = vmatprep.mubr.msk.f32.mxu0 %vm374_vm1, %v1094_v23  ;;  %v790_v46 = vld [vmem:[%s2551_s17] sm:$0xff]  ;;  %v791_v47 = vld [vmem:[%s2551_s17 + $0x10] sm:$0xff] }
  0x2b   : > { %2098 = vmatprep.mubr.msk.f32.mxu1 %vm374_vm1, %v355_v24  ;;  %v792_v48 = vld [vmem:[%s2551_s17 + $0x20] sm:$0xff]  ;;  %v793_v50 = vld [vmem:[%s2551_s17 + $0x30] sm:$0xff] }
  0x2c   : > { %v1963_v49 = vld [vmem:[%s2538_s11 + $0x40] sm:$0xff]  ;;  %v795_v52 = vld [vmem:[%s2551_s17 + $0x50] sm:$0xff]  ;;  %s325_s11 = sand.u32 1, %s2395_s22  }
  0x2d   : > { %2161 = vmatmul.mubr.msk.f32.gmra.mrb[4].mxu0 %vm374_vm1, %v1095_v25  ;;  %v794_v51 = vld [vmem:[%s2551_s17 + $0x40] sm:$0xff]  ;;  %v797_v54 = vld [vmem:[%s2551_s17 + $0x70] sm:$0xff]  ;;  %s2765_s24 = scalar_lea.sflag [#allocation3], %s325_s11 }
  0x2e   : > { %2099 = vmatmul.mubr.msk.f32.vlgmr.msra.gmra.mrb[0].mxu1 %vm374_vm1, %v356_v26  ;;  %2163 = vmatprep.mubr.msk.f32.mxu0 %vm374_vm1, %v1096_v27  ;;  %v796_v53 = vld [vmem:[%s2551_s17 + $0x60] sm:$0xff]  ;;  %v946_v57 = vld [vmem:[%s2543_s14 + $0x30] sm:$0xff]  ;;  %s1872_s17 = sshll.u32 %s325_s11, 6 }
  0x2f   : > { %2111 = vmatpush3.msk.msra.mxu1 %vm399_vm0, %v1898_v11  ;;  %2101 = vmatprep.mubr.msk.f32.mxu1 %vm374_vm1, %v357_v28  ;;  %v944_v55 = vld [vmem:[%s2543_s14 + $0x20] sm:$0xff]  ;;  %s2744_s14 = scalar_lea.vmem [#allocation2], %s1872_s17 }
  0x30   : > { %2124 = vmatprep.subr.msk.mxu1 %vm399_vm0, %v1908_v29  ;;  %v1981_v58 = vld [vmem:[%s2601_s12 + $0x81] sm:$0xff]  ;;  %s1730_s8 = sshll.u32 %s2744_s14, 4  ;;  %s2759_s8 = int_to_ptr.vmem [resolvable:$true] %s1730_s8 }
  0x31   : > { %2164 = vmatmul.mubr.msk.f32.gmra.mrb[6].mxu0 %vm374_vm1, %v1097_v30  ;;  %s2333_s16 = scalar_lea.vmem %s2759_s8, 1024  ;;  %p2340_p1 = scmp.lt.s32.totalorder %s2759_s8, %s2338_s20 }
  0x32   : > { %2102 = vmatmul.mubr.msk.f32.gmra.mrb[2].mxu1 %vm374_vm1, %v358_v31  ;;  %2168 = vmatprep.mubr.msk.f32.mxu0 %vm374_vm1, %v356_v26  ;;  %p2334_p12 = scmp.ne.s32.totalorder %s2759_s8, %s2333_s16  ;;  %p2341_p2 = scmp.lt.s32.totalorder %s2339_s27, %s2333_s16 }
  0x33   : > { %2104 = vmatprep.mubr.msk.f32.mxu1 %vm374_vm1, %v359_v32 }
  0x34   : > { %p2335_p13 = pnand %p2334_p12, %p2491_p4  ;;  %p2342_p3 = por %p2341_p2, %p2340_p1 }
  0x35   : > { %2169 = vmatmul.mubr.msk.f32.vlgmr.msra.gmra.mrb[0].mxu0 %vm374_vm1, %v357_v28 }
  0x36   : > { %2105 = vmatmul.mubr.msk.f32.gmra.mrb[4].mxu1 %vm374_vm1, %v360_v33  ;;  %2181 = vmatpush3.msk.msra.mxu0 %vm399_vm0, %v1964_v20  ;;  %p2336_p0 = pneg %p2335_p13 }
  0x37   : > { %2171 = vmatprep.mubr.msk.f32.mxu0 %vm374_vm1, %v358_v31  ;;  %2107 = vmatprep.mubr.msk.f32.mxu1 %vm374_vm1, %v361_v34 }
  0x38   : > { %2194 = vmatprep.subr.msk.mxu0 %vm399_vm0, %v1982_v35  ;;  %p2343_p5 = pnand %p2342_p3, %p2336_p0 }
  0x39   : > { %2172 = vmatmul.mubr.msk.f32.gmra.mrb[2].mxu0 %vm374_vm1, %v359_v32 }
  0x3a   : > { %2108 = vmatmul.mubr.msk.f32.gmra.mrb[6].mxu1 %vm374_vm1, %v362_v36  ;;  %2174 = vmatprep.mubr.msk.f32.mxu0 %vm374_vm1, %v360_v33 }
  0x3b   : > { %2112 = vmatprep.mubr.msk.f32.mxu1 %vm374_vm1, %v640_v37 }
  0x3d   : > { %2175 = vmatmul.mubr.msk.f32.gmra.mrb[4].mxu0 %vm374_vm1, %v361_v34 }
  0x3e   : > { %2113 = vmatmul.mubr.msk.f32.vlgmr.msra.gmra.mrb[0].mxu1 %vm374_vm1, %v641_v38  ;;  %2177 = vmatprep.mubr.msk.f32.mxu0 %vm374_vm1, %v362_v36 }
  0x3f   : > { %2125 = vmatpush3.msk.msra.mxu1 %vm399_vm0, %v1908_v29  ;;  %2115 = vmatprep.mubr.msk.f32.mxu1 %vm374_vm1, %v642_v39 }
  0x40   : > { %2208 = vmatprep.subr.msk.mxu1 %vm399_vm0, %v2512_v1 }
  0x41   : > { %2178 = vmatmul.mubr.msk.f32.gmra.mrb[6].mxu0 %vm374_vm1, %v1945_v40 }
  0x42   : > { %2116 = vmatmul.mubr.msk.f32.gmra.mrb[2].mxu1 %vm374_vm1, %v643_v41  ;;  %2182 = vmatprep.mubr.msk.f32.mxu0 %vm374_vm1, %v2556_v7 }
  0x43   : > { %2118 = vmatprep.mubr.msk.f32.mxu1 %vm374_vm1, %v644_v42 }
  0x45   : > { %2183 = vmatmul.mubr.msk.f32.vlgmr.msra.gmra.mrb[0].mxu0 %vm374_vm1, %v2560_v9 }
  0x46   : > { %2119 = vmatmul.mubr.msk.f32.gmra.mrb[4].mxu1 %vm374_vm1, %v645_v43  ;;  %2195 = vmatpush3.msk.msra.mxu0 %vm399_vm0, %v1982_v35 }
  0x47   : > { %2185 = vmatprep.mubr.msk.f32.mxu0 %vm374_vm1, %v2575_v13  ;;  %2121 = vmatprep.mubr.msk.f32.mxu1 %vm374_vm1, %v646_v44 }
  0x49   : > { %2186 = vmatmul.mubr.msk.f32.gmra.mrb[2].mxu0 %vm374_vm1, %v2582_v15 }
  0x4a   : > { %2122 = vmatmul.mubr.msk.f32.gmra.mrb[6].mxu1 %vm374_vm1, %v647_v45  ;;  %2188 = vmatprep.mubr.msk.f32.mxu0 %vm374_vm1, %v2595_v17 }
  0x4b   : > { %2126 = vmatprep.mubr.msk.f32.mxu1 %vm374_vm1, %v790_v46 }
  0x4d   : > { %2189 = vmatmul.mubr.msk.f32.gmra.mrb[4].mxu0 %vm374_vm1, %v2604_v19 }
  0x4e   : > { %2127 = vmatmul.mubr.msk.f32.vlgmr.msra.gmra.mrb[0].mxu1 %vm374_vm1, %v791_v47  ;;  %2191 = vmatprep.mubr.msk.f32.mxu0 %vm374_vm1, %v2616_v22 }
  0x4f   : > { %2209 = vmatpush3.msk.msra.mxu1 %vm399_vm0, %v2512_v1  ;;  %2129 = vmatprep.mubr.msk.f32.mxu1 %vm374_vm1, %v792_v48  ;;  %v1992_v1 = vld [vmem:[%s2816_s5] ss:$0 sm:$0xff] }
  0x51   : > { %2192 = vmatmul.mubr.msk.f32.gmra.mrb[6].mxu0 %vm374_vm1, %v1963_v49 }
  0x52   : > { %2130 = vmatmul.mubr.msk.f32.gmra.mrb[2].mxu1 %vm374_vm1, %v793_v50  ;;  %2196 = vmatprep.mubr.msk.f32.mxu0 %vm374_vm1, %v641_v38 }
  0x53   : > { %2132 = vmatprep.mubr.msk.f32.mxu1 %vm374_vm1, %v794_v51 }
  0x55   : > { %2197 = vmatmul.mubr.msk.f32.vlgmr.msra.gmra.mrb[0].mxu0 %vm374_vm1, %v642_v39 }
  0x56   : > { %2133 = vmatmul.mubr.msk.f32.gmra.mrb[4].mxu1 %vm374_vm1, %v795_v52  ;;  %2199 = vmatprep.mubr.msk.f32.mxu0 %vm374_vm1, %v643_v41 }
  0x57   : > { %2135 = vmatprep.mubr.msk.f32.mxu1 %vm374_vm1, %v796_v53 }
  0x59   : > { %2200 = vmatmul.mubr.msk.f32.gmra.mrb[2].mxu0 %vm374_vm1, %v644_v42 }
  0x5a   : > { %2136 = vmatmul.mubr.msk.f32.gmra.mrb[6].mxu1 %vm374_vm1, %v797_v54  ;;  %2202 = vmatprep.mubr.msk.f32.mxu0 %vm374_vm1, %v645_v43 }
  0x5b   : > { %2146 = vmatprep.mubr.msk.f32.mxu1 %vm374_vm1, %v944_v55 }
  0x5d   : > { %2203 = vmatmul.mubr.msk.f32.gmra.mrb[4].mxu0 %vm374_vm1, %v646_v44 }
  0x5e   : > { %2147 = vmatmul.mubr.msk.f32.vlgmr.msra.gmra.mrb[4].mxu1 %vm374_vm1, %v945_v56  ;;  %2205 = vmatprep.mubr.msk.f32.mxu0 %vm374_vm1, %v647_v45 }
  0x5f   : > { %2149 = vmatprep.mubr.msk.f32.mxu1 %vm374_vm1, %v946_v57 }
  0x61   : > { %2206 = vmatmul.mubr.msk.f32.gmra.mrb[6].mxu0 %vm374_vm1, %v1981_v58 }
  0x62   : > { %2150 = vmatmul.mubr.msk.f32.gmra.mrb[6].mxu1 %vm374_vm1, %v947_v59 }
 0x121   : > { %v2128_v60 = vpop.f32.mrb[0].mxu1 }
 0x122   : > { %v893_v61 = vpop.f32.mrb[1].mxu1 }
 0x125   : > { %v2131_v62 = vpop.f32.mrb[2].mxu1 }
 0x126   : > { %v903_v63 = vpop.f32.mrb[3].mxu1 }
 0x128   : > { %v2198_v0 = vpop.f32.mrb[0].mxu0 }
 0x129   : > { %v2210_v2 = vadd.f32 %v2198_v0, %v2128_v60  ;;  %v1645_v3 = vpop.f32.mrb[1].mxu0 }
 0x12a   : > { %v2211_v4 = vadd.f32 %v1645_v3, %v893_v61 }
 0x12b   : > { %v1700_v5 = vadd.f32 %v2210_v2, %v1992_v1 }
 0x12c   : > { %v1699_v6 = vadd.f32 %v2211_v4, %v1992_v1  ;;  %v2201_v7 = vpop.f32.mrb[2].mxu0 }
 0x12d   : > { %1708 = vst [vmem:[%s2744_s14 + $0x8] sm:$0xff] %v1700_v5  ;;  %v2212_v8 = vadd.f32 %v2201_v7, %v2131_v62  ;;  %v1655_v9 = vpop.f32.mrb[3].mxu0 }
 0x12e   : > { %1707 = vst [vmem:[%s2744_s14] sm:$0xff] %v1699_v6  ;;  %v2213_v10 = vadd.f32 %v1655_v9, %v903_v63 }
 0x12f   : > { %v1702_v11 = vadd.f32 %v2212_v8, %v1992_v1 }
 0x130   : > { %v1701_v12 = vadd.f32 %v2213_v10, %v1992_v1  ;;  %v2204_v13 = vpop.f32.mrb[4].mxu0 }
 0x131   : > { %v2148_v14 = vpop.f32.mrb[4].mxu1  ;;  %1710 = vst [vmem:[%s2744_s14 + $0x18] sm:$0xff] %v1702_v11  ;;  %v1665_v16 = vpop.f32.mrb[5].mxu0 }
 0x132   : > { %v2214_v15 = vadd.f32 %v2204_v13, %v2148_v14  ;;  %v1063_v17 = vpop.f32.mrb[5].mxu1  ;;  %1709 = vst [vmem:[%s2744_s14 + $0x10] sm:$0xff] %v1701_v12 }
 0x133   : > { %v2215_v18 = vadd.f32 %v1665_v16, %v1063_v17 }
 0x134   : > { %v1704_v19 = vadd.f32 %v2214_v15, %v1992_v1  ;;  %v2207_v21 = vpop.f32.mrb[6].mxu0 }
 0x135   : > { %v1703_v20 = vadd.f32 %v2215_v18, %v1992_v1  ;;  %v2151_v22 = vpop.f32.mrb[6].mxu1  ;;  %v1675_v24 = vpop.f32.mrb[7].mxu0 }
 0x136   : > { %1712 = vst [vmem:[%s2744_s14 + $0x28] sm:$0xff] %v1704_v19  ;;  %v2216_v23 = vadd.f32 %v2207_v21, %v2151_v22  ;;  %v1073_v25 = vpop.f32.mrb[7].mxu1 }
 0x137   : > { %1711 = vst [vmem:[%s2744_s14 + $0x20] sm:$0xff] %v1703_v20  ;;  %v2217_v26 = vadd.f32 %v1675_v24, %v1073_v25 }
 0x138   : > { %v1706_v27 = vadd.f32 %v2216_v23, %v1992_v1 }
 0x139   : > { %v1705_v28 = vadd.f32 %v2217_v26, %v1992_v1 }
 0x13a   : > { %1714 = vst [vmem:[%s2744_s14 + $0x38] sm:$0xff] %v1706_v27 }
 0x13b   : > { %1713 = vst [vmem:[%s2744_s14 + $0x30] sm:$0xff] %v1705_v28 }
 0x13c   : > { %2346 = shalt.err (!%p2343_p5)
}
 0x13d   : > { %s2347_s11 = scalar_lea.hbm %s2757_s15, 1024  ;;  %s2351_s30 = scalar_lea.hbm %s2817_s6, 2048 }
 0x13e   : > { %p2348_p6 = scmp.ne.s32.totalorder %s2757_s15, %s2347_s11  ;;  %p2352_p10 = scmp.lt.u32.totalorder %s2757_s15, %s2817_s6 }
 0x13f   : > { %p2353_p11 = scmp.lt.u32.totalorder %s2351_s30, %s2347_s11  ;;  %p2355_p13 = scmp.lt.u32.totalorder %s2347_s11, %s2757_s15 }
 0x140   : > { %p2349_p7 = pnand %p2348_p6, %p2491_p4 }
 0x141   : > { %p2354_p12 = por %p2353_p11, %p2352_p10 }
 0x142   : > { %p2350_p9 = pneg %p2349_p7 }
 0x143   : > { %p2356_p0 = por %p2355_p13, %p2354_p12 }
 0x145   : > { %p2357_p1 = pnand %p2356_p0, %p2350_p9 }
 0x147   : > { %2360 = shalt.err (!%p2357_p1)
}
 0x148   : > { %s2414_s12 = smov 128   ;;  %s2415_s13 = smov 8  }
 0x149   : > { %2276 = dma.vmem_to_hbm [thread:$0]  (%p2491_p4), %s2759_s8, 1024, %s2757_s15, %s2765_s24, %s2414_s12, %s2414_s12, %s2415_s13  }
 0x14a PF: > { %p2282_p2 = scmp.ge.s32.totalorder %s2411_s26, 2  ;;  %s1745_s16 = sand.u32 1, %s2391_s21  }
 0x14b   : > { %s1746_s18 = scalar_lea.sflag [#allocation3], %s1745_s16 }
 0x14c   : > { %p2279_p3 = pnand %p2282_p2, %p2498_p8 }
 0x14e   : > { %2386 = dma.done.wait (!%p2279_p3), %s1746_s18, 1024  }
 0x14f   : > { %2388 = vsyncadd (!%p2279_p3), %s1746_s18, 4294966272  ;;  %s19_s26 = sadd.s32 1, %s2411_s26   ;;  %s2820_s21 = smov %s2395_s22 }
 0x150   : > { %p16_p5 = scmp.ge.s32.totalorder %s19_s26, 4   ;;  %s2821_s22 = smov %s2399_s23 }
 0x151   : > { %s2822_s23 = smov %s2504_s10  ;;  %s2823_s24 = smov %s2407_s25 }
 0x152   : > { %s2824_s25 = smov %s2826_s29  ;;  %18 = sbr.rel (!%p16_p5) target bundleno = 4 (0x4), region = 104 }
 0x159   :  { %1751 = vsyncpa [#allocation3], 1 }
 0x15a   :  { %1753 = vsyncpa [#allocation3 + $0x1], 1 }

</bundles_post_ra>
